<compile_context>
chip_gen: v5e
topology: v5e:2x2
jax: 0.10.0
libtpu: 0.0.40
codegen_flags: <defaults>
</compile_context>

<pallas_src>
import math

import jax
import jax.numpy as jnp
from jax.experimental import pallas as pl
from jax.experimental.pallas import tpu as pltpu


def policy_net_kernel(x_ref, w1_ref, b1_ref, w2_ref, b2_ref, w3_ref, b3_ref, o_ref):
    # fc1 + ReLU (f32 accumulate / bias / activation regardless of matmul dtype)
    h1 = jnp.dot(x_ref[...], w1_ref[...], preferred_element_type=jnp.float32)
    h1 = jnp.maximum(h1 + b1_ref[...], 0.0)
    # fc2 + ReLU
    h2 = jnp.dot(h1.astype(w2_ref.dtype), w2_ref[...],
                 preferred_element_type=jnp.float32)
    h2 = jnp.maximum(h2 + b2_ref[...], 0.0)
    # out (no activation); output block is the full (narrow) n_out width — no lane pad
    o = jnp.dot(h2.astype(w3_ref.dtype), w3_ref[...],
                preferred_element_type=jnp.float32)
    o_ref[...] = (o + b3_ref[...]).astype(o_ref.dtype)


def _round_up(x, m):
    return (x + m - 1) // m * m


def _cdiv(a, b):
    return -(-a // b)


def policy_net_forward(x, w1, b1, w2, b2, w3, b3, *, tb=None,
                       matmul_dtype=jnp.bfloat16):
    """Fused 3-layer MLP forward. Returns (B, n_out) float32.

    matmul_dtype: dtype fed to the MXU (default bf16 — the native MXU dtype on
    v5e/v6e/v7x). Accumulation, biases, ReLU and the output stay float32.
    """
    B, n_in = x.shape
    n_h1 = w1.shape[1]
    n_h2 = w2.shape[1]
    n_out = w3.shape[1]

    # --- batch tile: big tiles amortize per-step overhead; cap so the grid has >= 2
    #     steps when possible so v7x's two TensorCores both get work. ---
    if tb is None:
        tb = min(2048, _round_up(B, 8))
        if B > 8:
            tb = min(tb, _round_up(_cdiv(B, 2), 8))
    tb = max(8, _round_up(tb, 8))
    B_pad = _round_up(B, tb)
    xp = x if B_pad == B else jnp.zeros((B_pad, n_in), x.dtype).at[:B].set(x)

    # low-precision matmul inputs; biases stay fp32
    xp = xp.astype(matmul_dtype)
    w1c = w1.astype(matmul_dtype)
    w2c = w2.astype(matmul_dtype)
    w3c = w3.astype(matmul_dtype)
    b1c = b1.astype(jnp.float32)
    b2c = b2.astype(jnp.float32)
    b3c = b3.astype(jnp.float32)

    grid = (B_pad // tb,)

    # --- VMEM budget with real (lane/sublane-padded) tile footprints ---
    isz = jnp.dtype(matmul_dtype).itemsize

    def padded_bytes(r, c, itemsize):
        sub = 8 * (4 // itemsize)            # 8 sublanes for f32, 16 for bf16
        return _round_up(r, sub) * _round_up(c, 128) * itemsize

    weight_bytes = (padded_bytes(n_in, n_h1, isz) + padded_bytes(n_h1, n_h2, isz)
                    + padded_bytes(n_h2, n_out, isz)
                    + padded_bytes(1, n_h1, 4) + padded_bytes(1, n_h2, 4)
                    + padded_bytes(1, n_out, 4))
    stream_bytes = 2 * (padded_bytes(tb, n_in, isz)        # double-buffered x tiles
                        + padded_bytes(tb, n_out, 4))      # double-buffered out tiles
    interm_bytes = (padded_bytes(tb, n_h1, 4) + padded_bytes(tb, n_h2, 4)   # f32 h1/h2
                    + padded_bytes(tb, n_h1, isz) + padded_bytes(tb, n_h2, isz))  # casts
    vmem_limit = max(int(2 * weight_bytes + stream_bytes + interm_bytes + (4 << 20)),
                     32 << 20)

    # Pinned (constant block-index) specs: weights/biases stay resident across the grid.
    pinned = lambda shape: pl.BlockSpec(shape, lambda i: (0, 0))

    out_padded = pl.pallas_call(
        policy_net_kernel,
        out_shape=jax.ShapeDtypeStruct((B_pad, n_out), jnp.float32),
        grid=grid,
        in_specs=[
            pl.BlockSpec((tb, n_in), lambda i: (i, 0)),   # streamed activation tile
            pinned((n_in, n_h1)), pinned((1, n_h1)),
            pinned((n_h1, n_h2)), pinned((1, n_h2)),
            pinned((n_h2, n_out)), pinned((1, n_out)),
        ],
        out_specs=pl.BlockSpec((tb, n_out), lambda i: (i, 0)),
        compiler_params=pltpu.CompilerParams(
            dimension_semantics=("parallel",),   # shard batch tiles over v7x's 2 TCs
            vmem_limit_bytes=vmem_limit,
        ),
    )(xp, w1c, b1c, w2c, b2c, w3c, b3c)

    return out_padded[:B]


def init_linear(key, fan_in, fan_out):
    # Mimic PyTorch nn.Linear default init: U(-1/sqrt(fan_in), 1/sqrt(fan_in)).
    kw, kb = jax.random.split(key)
    bound = 1.0 / math.sqrt(fan_in)
    w = jax.random.uniform(kw, (fan_in, fan_out), jnp.float32, -bound, bound)
    b = jax.random.uniform(kb, (1, fan_out), jnp.float32, -bound, bound)
    return w, b


if __name__ == "__main__":
    n_in, n_hidden1, n_hidden2, n_out = 8, 256, 128, 4
    batch = 32  # small demo batch; auto-tb gives a 2-step grid, tb=8 gives 4 steps

    key = jax.random.PRNGKey(0)
    kx, k1, k2, k3 = jax.random.split(key, 4)

    x = jax.random.normal(kx, (batch, n_in), jnp.float32)
    w1, b1 = init_linear(k1, n_in, n_hidden1)
    w2, b2 = init_linear(k2, n_hidden1, n_hidden2)
    w3, b3 = init_linear(k3, n_hidden2, n_out)

    # Pure-JAX fp32 reference.
    ref = jnp.maximum(x @ w1 + b1, 0.0)
    ref = jnp.maximum(ref @ w2 + b2, 0.0)
    ref = ref @ w3 + b3

    # Default perf path: bf16 matmuls, fp32 accumulation/bias/ReLU, auto batch tile.
    out_bf16 = policy_net_forward(x, w1, b1, w2, b2, w3, b3)
    jax.block_until_ready(out_bf16)
    assert out_bf16.shape == (batch, n_out)
    assert jnp.allclose(out_bf16, ref, atol=3e-2, rtol=3e-2), "bf16 path diverged"

    # Tight-tolerance correctness path: fp32 matmuls, multi-step batch-tiled grid.
    out_f32 = policy_net_forward(x, w1, b1, w2, b2, w3, b3, tb=8,
                                 matmul_dtype=jnp.float32)
    jax.block_until_ready(out_f32)
    assert jnp.allclose(out_f32, ref, atol=1e-5, rtol=1e-5), "fp32 path diverged"

    print("KERNEL_OK")
</pallas_src>

<mosaic_0001>
module attributes {stable_mosaic.version = 11 : i64} {
  func.func @policy_net_kernel(%arg0: i32, %arg1: memref<16x8xbf16, #tpu.memory_space<vmem>>, %arg2: memref<8x256xbf16, #tpu.memory_space<vmem>>, %arg3: memref<1x256xf32, #tpu.memory_space<vmem>>, %arg4: memref<256x128xbf16, #tpu.memory_space<vmem>>, %arg5: memref<1x128xf32, #tpu.memory_space<vmem>>, %arg6: memref<128x4xbf16, #tpu.memory_space<vmem>>, %arg7: memref<1x4xf32, #tpu.memory_space<vmem>>, %arg8: memref<16x4xf32, #tpu.memory_space<vmem>>) attributes {dimension_semantics = [#tpu.dimension_semantics<parallel>], iteration_bounds = array<i64: 2>, scalar_prefetch = 0 : i64, scratch_operands = 0 : i64, tpu.core_type = #tpu.core_type<tc>, window_params = [{transform_indices = @transform_0, window_bounds = array<i64: 16, 8>}, {pipeline_mode = #tpu.pipeline_mode<synchronous>, transform_indices = @transform_1, window_bounds = array<i64: 8, 256>}, {pipeline_mode = #tpu.pipeline_mode<synchronous>, transform_indices = @transform_2, window_bounds = array<i64: 1, 256>}, {pipeline_mode = #tpu.pipeline_mode<synchronous>, transform_indices = @transform_3, window_bounds = array<i64: 256, 128>}, {pipeline_mode = #tpu.pipeline_mode<synchronous>, transform_indices = @transform_4, window_bounds = array<i64: 1, 128>}, {pipeline_mode = #tpu.pipeline_mode<synchronous>, transform_indices = @transform_5, window_bounds = array<i64: 128, 4>}, {pipeline_mode = #tpu.pipeline_mode<synchronous>, transform_indices = @transform_6, window_bounds = array<i64: 1, 4>}, {transform_indices = @transform_7, window_bounds = array<i64: 16, 4>}]} {
    %c0 = arith.constant 0 : index
    %c0_0 = arith.constant 0 : index
    %0 = vector.load %arg1[%c0, %c0_0] : memref<16x8xbf16, #tpu.memory_space<vmem>>, vector<16x8xbf16>
    %c0_1 = arith.constant 0 : index
    %c0_2 = arith.constant 0 : index
    %1 = vector.load %arg2[%c0_1, %c0_2] : memref<8x256xbf16, #tpu.memory_space<vmem>>, vector<8x256xbf16>
    %cst = arith.constant dense<0.000000e+00> : vector<16x256xf32>
    %2 = tpu.matmul %0, %1, %cst {dimension_numbers = #tpu.dot_dimension_numbers<[1], [0], [0], [1], [0, 0, 1, 1], [], []>} : vector<16x8xbf16>, vector<8x256xbf16>, vector<16x256xf32> -> vector<16x256xf32>
    %c0_3 = arith.constant 0 : index
    %c0_4 = arith.constant 0 : index
    %3 = vector.load %arg3[%c0_3, %c0_4] : memref<1x256xf32, #tpu.memory_space<vmem>>, vector<1x256xf32>
    %4 = vector.broadcast %3 : vector<1x256xf32> to vector<16x256xf32>
    %5 = arith.addf %2, %4 : vector<16x256xf32>
    %cst_5 = arith.constant 0.000000e+00 : f32
    %6 = vector.broadcast %cst_5 : f32 to vector<16x256xf32>
    %7 = arith.maximumf %5, %6 : vector<16x256xf32>
    %8 = arith.truncf %7 : vector<16x256xf32> to vector<16x256xbf16>
    %c0_6 = arith.constant 0 : index
    %c0_7 = arith.constant 0 : index
    %9 = vector.load %arg4[%c0_6, %c0_7] : memref<256x128xbf16, #tpu.memory_space<vmem>>, vector<256x128xbf16>
    %cst_8 = arith.constant dense<0.000000e+00> : vector<16x128xf32>
    %10 = tpu.matmul %8, %9, %cst_8 {dimension_numbers = #tpu.dot_dimension_numbers<[1], [0], [0], [1], [0, 0, 1, 1], [], []>} : vector<16x256xbf16>, vector<256x128xbf16>, vector<16x128xf32> -> vector<16x128xf32>
    %c0_9 = arith.constant 0 : index
    %c0_10 = arith.constant 0 : index
    %11 = vector.load %arg5[%c0_9, %c0_10] : memref<1x128xf32, #tpu.memory_space<vmem>>, vector<1x128xf32>
    %12 = vector.broadcast %11 : vector<1x128xf32> to vector<16x128xf32>
    %13 = arith.addf %10, %12 : vector<16x128xf32>
    %cst_11 = arith.constant 0.000000e+00 : f32
    %14 = vector.broadcast %cst_11 : f32 to vector<16x128xf32>
    %15 = arith.maximumf %13, %14 : vector<16x128xf32>
    %16 = arith.truncf %15 : vector<16x128xf32> to vector<16x128xbf16>
    %c0_12 = arith.constant 0 : index
    %c0_13 = arith.constant 0 : index
    %17 = vector.load %arg6[%c0_12, %c0_13] : memref<128x4xbf16, #tpu.memory_space<vmem>>, vector<128x4xbf16>
    %cst_14 = arith.constant dense<0.000000e+00> : vector<16x4xf32>
    %18 = tpu.matmul %16, %17, %cst_14 {dimension_numbers = #tpu.dot_dimension_numbers<[1], [0], [0], [1], [0, 0, 1, 1], [], []>} : vector<16x128xbf16>, vector<128x4xbf16>, vector<16x4xf32> -> vector<16x4xf32>
    %c0_15 = arith.constant 0 : index
    %c0_16 = arith.constant 0 : index
    %19 = vector.load %arg7[%c0_15, %c0_16] : memref<1x4xf32, #tpu.memory_space<vmem>>, vector<1x4xf32>
    %20 = vector.broadcast %19 : vector<1x4xf32> to vector<16x4xf32>
    %21 = arith.addf %18, %20 : vector<16x4xf32>
    %c0_17 = arith.constant 0 : index
    %c0_18 = arith.constant 0 : index
    %22 = vector.load %arg8[%c0_17, %c0_18] : memref<16x4xf32, #tpu.memory_space<vmem>>, vector<16x4xf32>
    tpu.vector_store %arg8[%c0_17, %c0_18], %21 {strides = array<i32>} : memref<16x4xf32, #tpu.memory_space<vmem>>, vector<16x4xf32>,
    return
  }
  func.func @transform_0(%arg0: i32) -> (i32, i32) {
    %c0_i32 = arith.constant 0 : i32
    %c0_i32_0 = arith.constant 0 : i32
    return %arg0, %c0_i32 : i32, i32
  }
  func.func @transform_1(%arg0: i32) -> (i32, i32) {
    %c0_i32 = arith.constant 0 : i32
    %c0_i32_0 = arith.constant 0 : i32
    %c0_i32_1 = arith.constant 0 : i32
    return %c0_i32, %c0_i32_0 : i32, i32
  }
  func.func @transform_2(%arg0: i32) -> (i32, i32) {
    %c0_i32 = arith.constant 0 : i32
    %c0_i32_0 = arith.constant 0 : i32
    %c0_i32_1 = arith.constant 0 : i32
    return %c0_i32, %c0_i32_0 : i32, i32
  }
  func.func @transform_3(%arg0: i32) -> (i32, i32) {
    %c0_i32 = arith.constant 0 : i32
    %c0_i32_0 = arith.constant 0 : i32
    %c0_i32_1 = arith.constant 0 : i32
    return %c0_i32, %c0_i32_0 : i32, i32
  }
  func.func @transform_4(%arg0: i32) -> (i32, i32) {
    %c0_i32 = arith.constant 0 : i32
    %c0_i32_0 = arith.constant 0 : i32
    %c0_i32_1 = arith.constant 0 : i32
    return %c0_i32, %c0_i32_0 : i32, i32
  }
  func.func @transform_5(%arg0: i32) -> (i32, i32) {
    %c0_i32 = arith.constant 0 : i32
    %c0_i32_0 = arith.constant 0 : i32
    %c0_i32_1 = arith.constant 0 : i32
    return %c0_i32, %c0_i32_0 : i32, i32
  }
  func.func @transform_6(%arg0: i32) -> (i32, i32) {
    %c0_i32 = arith.constant 0 : i32
    %c0_i32_0 = arith.constant 0 : i32
    %c0_i32_1 = arith.constant 0 : i32
    return %c0_i32, %c0_i32_0 : i32, i32
  }
  func.func @transform_7(%arg0: i32) -> (i32, i32) {
    %c0_i32 = arith.constant 0 : i32
    %c0_i32_0 = arith.constant 0 : i32
    return %arg0, %c0_i32 : i32, i32
  }
}

</mosaic_0001>

<bundles_post_ra>
// kernel: tpu_custom_call.1
= control target key start
LH: loop header
LB: loop body
LE: loop exit
PB: predicated region body
PF: predicated region fallthrough
CT: control target
= control target key end

     0   :  { %12 = vsyncpa [#allocation3], 0  ;;  %s928_s24 = smov 0   ;;  %s988_s0 = inlined_call_operand.vmem [shape: bf16[32,8], index: 0, kind: input, shape index: {}]   ;;  %s989_s1 = inlined_call_operand.vmem [shape: bf16[8,256], index: 1, kind: input, shape index: {}]   ;;  %s990_s2 = inlined_call_operand.vmem [shape: f32[1,256], index: 2, kind: input, shape index: {}]   ;;  %s991_s3 = inlined_call_operand.hbm [shape: bf16[256,128], index: 3, kind: input, shape index: {}]   ;;  %s992_s4 = inlined_call_operand.vmem [shape: f32[1,128], index: 4, kind: input, shape index: {}]   ;;  %s993_s5 = inlined_call_operand.vmem [shape: bf16[128,4], index: 5, kind: input, shape index: {}]   ;;  %s994_s6 = inlined_call_operand.vmem [shape: f32[1,4], index: 6, kind: input, shape index: {}]   ;;  %s995_s7 = inlined_call_operand.vmem [shape: f32[32,4], index: 7, kind: output, shape index: {}]  }
   0x1 LB: > { %s218_s27 = sshll.u32 %s991_s3, 4  ;;  %s680_s28 = sadd.s32 4294967295, %s883_s24   ;;  %s883_s24 = sphi %s928_s24, %s18_s24   ;;  %s219_s27 = int_to_ptr.hbm [resolvable:$true] %s218_s27 }
   0x2   : > { %p682_p0 = scmp.ge.s32.totalorder %s883_s24, 1  ;;  %p201_p1 = scmp.lt.s32.totalorder %s883_s24, 3 }
   0x3   : > { %p828_p2 = scmp.eq.s32.totalorder %s680_s28, 0  ;;  %s885_s29 = smov [#allocation2]  }
   0x4   : > { %p202_p3 = pnand %p682_p0, %p201_p1  ;;  %s220_s30 = sshll.u32 %s885_s29, 4  ;;  %s221_s30 = int_to_ptr.vmem [resolvable:$true] %s220_s30 }
   0x5   : > { %s886_s8 = smov 64   ;;  %s887_s9 = smov 4  }
   0x6   : > { %p824_p4 = pneg %p202_p3  ;;  %254 = sbr.rel (%p202_p3) target bundleno = 460 (0x1cc), region = 48 }
   0x8   : > { %p825_p5 = pnand %p828_p2, %p824_p4 }
   0xa   : > { %827 = dma.hbm_to_vmem [thread:$0]  (!%p825_p5), %s219_s27, 2048, %s221_s30, [#allocation3], %s886_s8, %s886_s8, %s887_s9  }
   0xb   : > { %878 = dma.done.wait (%p828_p2), [#allocation3], 2048  }
   0xc   : > { %880 = vsyncadd (%p828_p2), [#allocation3], 4294965248  ;;  %s687_s10 = sshll.u32 %s680_s28, 1  ;;  %v302_v0 = vld [vmem:[%s989_s1] sm:$0xff]  ;;  %v803_v1 = vld [vmem:[#allocation2 + $0x38] sm:$0xff]  ;;  %vm323_vm0 = vcmask 1043456  }
   0xd   : > { %p288_p6 = scmp.lt.s32.totalorder %s687_s10, 3  ;;  %v315_v2 = vunpack.c.l.b16 %v302_v0  ;;  %v316_v3 = vunpack.c.h.b16 %v302_v0  ;;  %496 = vmatpush.bf16.msra.mxu2 %v803_v1  ;;  %v802_v4 = vld [vmem:[#allocation2 + $0x30] sm:$0xff]  ;;  %vm319_vm1 = vcmask 64512   ;;  %v801_v10 = vld [vmem:[#allocation2 + $0x28] sm:$0xff]  ;;  %v800_v11 = vld [vmem:[#allocation2 + $0x20] sm:$0xff]  ;;  %vm609_vm2 = vcmask 31744  }
   0xe   : > { %v799_v12 = vld [vmem:[#allocation2 + $0x18] sm:$0xff]  ;;  %v798_v14 = vld [vmem:[#allocation2 + $0x10] sm:$0xff]  ;;  %v797_v16 = vld [vmem:[#allocation2 + $0x8] sm:$0xff] }
   0xf   : > { %s997_s10 = smov (!%p288_p6, %s687_s10), 3  ;;  %v317_v5 = vpack.c.b16 %v315_v2, %v315_v2  ;;  %v318_v6 = vpack.c.b16 %v316_v3, %v316_v3  ;;  %v811_v13 = vld [vmem:[#allocation2 + $0x78] sm:$0xff]  ;;  %v810_v15 = vld [vmem:[#allocation2 + $0x70] sm:$0xff]  ;;  %v809_v17 = vld [vmem:[#allocation2 + $0x68] sm:$0xff] }
  0x10   : > { %s688_s11 = sshll.u32 %s997_s10, 2  ;;  %510 = vmatpush.bf16.msra.mxu3 %v811_v13  ;;  %v796_v18 = vld [vmem:[#allocation2] sm:$0xff]  ;;  %v807_v20 = vld [vmem:[#allocation2 + $0x58] sm:$0xff]  ;;  %v806_v21 = vld [vmem:[#allocation2 + $0x50] sm:$0xff] }
  0x11   : > { %s291_s16 = scalar_lea.vmem %s988_s0, %s688_s11  ;;  %v325_v7 = vsel %vm323_vm0, %v317_v5, 0  ;;  %v328_v9 = vsel %vm323_vm0, %v318_v6, 0  ;;  %497 = vmatpush.bf16.msra.mxu2 %v802_v4  ;;  %v808_v19 = vld [vmem:[#allocation2 + $0x60] sm:$0xff]  ;;  %v805_v22 = vld [vmem:[#allocation2 + $0x48] sm:$0xff]  ;;  %v819_v41 = vld [vmem:[%s993_s5 + $0x38] sm:$0xff] }
  0x12   : > { %v795_v8 = vld [vmem:[%s291_s16] sm:$0xff]  ;;  %337 = vmatpush.bf16.msra.mxu1 %v325_v7  ;;  %595 = vmatpush.bf16.msra.mxu0 %v819_v41  ;;  %v818_v42 = vld [vmem:[%s993_s5 + $0x30] sm:$0xff]  ;;  %v817_v43 = vld [vmem:[%s993_s5 + $0x28] sm:$0xff]  ;;  %s690_s16 = sshll.u32 %s997_s10, 3 }
  0x13   : > { %v804_v23 = vld [vmem:[#allocation2 + $0x40] sm:$0xff]  ;;  %v815_v45 = vld [vmem:[%s993_s5 + $0x18] sm:$0xff]  ;;  %v814_v46 = vld [vmem:[%s993_s5 + $0x10] sm:$0xff]  ;;  %s297_s21 = scalar_lea.vmem %s995_s7, %s690_s16 }
  0x14   : > { %511 = vmatpush.bf16.msra.mxu3 %v810_v15  ;;  %v303_v24 = vld [vmem:[%s990_s2] sm:$0x3]  ;;  %v813_v47 = vld [vmem:[%s993_s5 + $0x8] sm:$0xff] }
  0x15   : > { %695 = vmatmul.msk.bf16.vlgmr.msra.gmra.mxu1 %vm319_vm1, %v795_v8  ;;  %498 = vmatpush.bf16.msra.mxu2 %v801_v10  ;;  %v305_v26 = vperm.slane %v303_v24, 0  ;;  %v306_v34 = vperm.slane %v303_v24, 1  ;;  %v816_v44 = vld [vmem:[%s993_s5 + $0x20] sm:$0xff] }
  0x16   : > { %351 = vmatpush.bf16.msrb.mxu1 %v328_v9  ;;  %596 = vmatpush.bf16.msra.mxu0 %v818_v42  ;;  %v812_v48 = vld [vmem:[%s993_s5] sm:$0xff] }
  0x17   : > { %v841_v51 = vld [vmem:[%s992_s4] ss:$0 sm:$0xff] }
  0x18   : > { %512 = vmatpush.bf16.msra.mxu3 %v809_v17  ;;  %v842_v61 = vld [vmem:[%s994_s6] ss:$0 sm:$0xff] }
  0x19   : > { %499 = vmatpush.bf16.msra.mxu2 %v800_v11 }
  0x1a   : > { %597 = vmatpush.bf16.msra.mxu0 %v817_v43 }
  0x1c   : > { %513 = vmatpush.bf16.msra.mxu3 %v808_v19 }
  0x1d   : > { %500 = vmatpush.bf16.msra.mxu2 %v799_v12 }
  0x1e   : > { %598 = vmatpush.bf16.msra.mxu0 %v816_v44 }
  0x20   : > { %514 = vmatpush.bf16.msra.mxu3 %v807_v20 }
  0x21   : > { %501 = vmatpush.bf16.msra.mxu2 %v798_v14 }
  0x22   : > { %599 = vmatpush.bf16.msra.mxu0 %v815_v45 }
  0x24   : > { %515 = vmatpush.bf16.msra.mxu3 %v806_v21 }
  0x25   : > { %696 = vmatmul.msk.bf16.vlgmr.msrb.gmra.mxu1 %vm319_vm1, %v795_v8  ;;  %502 = vmatpush.bf16.msra.mxu2 %v797_v16 }
  0x26   : > { %600 = vmatpush.bf16.msra.mxu0 %v814_v46 }
  0x28   : > { %516 = vmatpush.bf16.msra.mxu3 %v805_v22 }
  0x29   : > { %503 = vmatpush.bf16.msra.mxu2 %v796_v18 }
  0x2a   : > { %601 = vmatpush.bf16.msra.mxu0 %v813_v47 }
  0x2c   : > { %517 = vmatpush.bf16.msra.mxu3 %v804_v23 }
  0x2e   : > { %602 = vmatpush.bf16.msra.mxu0 %v812_v48 }
  0x92   : > { %v339_v25 = vpop.f32.mrf.mxu1 }
  0x93   : > { %v340_v27 = vadd.f32 %v339_v25, %v305_v26 }
  0x95   : > { %v358_v30 = vmax.f32 %v340_v27, 0.0 }
  0x9a   : > { %v341_v28 = vpop.f32.mrf.mxu1 }
  0x9b   : > { %v342_v29 = vadd.f32 %v341_v28, %v305_v26 }
  0x9d   : > { %v360_v31 = vmax.f32 %v342_v29, 0.0 }
  0x9f   : > { %v362_v32 = vpack.c.bf16 %v360_v31, %v358_v30 }
  0xa1   : > { %504 = vmatmul.bf16.vlgmr.msra.gmra.mxu2 %v362_v32 }
  0xa2   : > { %v353_v33 = vpop.f32.mrf.mxu1 }
  0xa3   : > { %v354_v35 = vadd.f32 %v353_v33, %v306_v34 }
  0xa5   : > { %v359_v38 = vmax.f32 %v354_v35, 0.0 }
  0xaa   : > { %v355_v36 = vpop.f32.mrf.mxu1 }
  0xab   : > { %v356_v37 = vadd.f32 %v355_v36, %v306_v34 }
  0xad   : > { %v361_v39 = vmax.f32 %v356_v37, 0.0 }
  0xaf   : > { %v363_v40 = vpack.c.bf16 %v361_v39, %v359_v38 }
  0xb1   : > { %518 = vmatmul.bf16.vlgmr.msra.gmra.mxu3 %v363_v40 }
 0x124   : > { %v505_v49 = vpop.f32.mrf.mxu2 }
 0x125   : > { %v506_v53 = vadd.f32 %v841_v51, %v505_v49 }
 0x12c   : > { %v507_v52 = vpop.f32.mrf.mxu2 }
 0x12d   : > { %v508_v54 = vadd.f32 %v841_v51, %v507_v52 }
 0x134   : > { %v519_v50 = vpop.f32.mrf.mxu3 }
 0x135   : > { %v520_v55 = vadd.f32 %v519_v50, %v506_v53 }
 0x137   : > { %v524_v58 = vmax.f32 %v520_v55, 0.0 }
 0x13c   : > { %v521_v56 = vpop.f32.mrf.mxu3 }
 0x13d   : > { %v522_v57 = vadd.f32 %v521_v56, %v508_v54 }
 0x13f   : > { %v525_v59 = vmax.f32 %v522_v57, 0.0 }
 0x141   : > { %v526_v60 = vpack.c.bf16 %v525_v59, %v524_v58 }
 0x143   : > { %603 = vmatmul.bf16.vlgmr.msra.gmra.mxu0 %v526_v60 }
 0x1c0   : > { %v604_v62 = vpop.f32.mrf.mxu0 }
 0x1c1   : > { %v605_v63 = vadd.f32 %v842_v61, %v604_v62 }
 0x1c3   : > { %610 = vst.msk [vmem:[%s297_s21] sm:$0xff] %vm609_vm2, %v605_v63 }
 0x1c8   : > { %v606_v0 = vpop.f32.mrf.mxu0 }
 0x1c9   : > { %v607_v1 = vadd.f32 %v842_v61, %v606_v0 }
 0x1cb   : > { %611 = vst.msk [vmem:[%s297_s21 + $0x8] sm:$0xff] %vm609_vm2, %v607_v1 }
 0x1cc PF: > { %s18_s24 = sadd.s32 1, %s883_s24  }
 0x1cd   : > { %p15_p7 = scmp.ge.s32.totalorder %s18_s24, 4  }
 0x1cf   :  { %17 = sbr.rel (!%p15_p7) target bundleno = 1 (0x1), region = 83 }
 0x1d4   :  { %634 = vsyncpa [#allocation3], 1 }
 0x1d5   :  { %636 = vsyncpa [#allocation3 + $0x1], 1 }

</bundles_post_ra>
